<compile_context>
chip_gen: v7x
topology: tpu7x:2x2x1
jax: 0.10.0
libtpu: 0.0.40
codegen_flags: <defaults>
</compile_context>

<pallas_src>
import math

import jax
import jax.numpy as jnp
from jax.experimental import pallas as pl
from jax.experimental.pallas import tpu as pltpu


_TILE_TARGET_BYTES = 2 * 1024 * 1024  # per-buffer tile; in+out double-buffered ~8 MiB


def _drop_path_kernel(scale_ref, x_ref, o_ref):
    # scale_ref: (TB, 1) f32 per-sample keep/keep_prob; x_ref/o_ref: (TB, TF).
    # Multiply in f32 (promotion) and cast the product once to storage dtype.
    o_ref[...] = (x_ref[...] * scale_ref[...]).astype(o_ref.dtype)


def _choose_tiles(b, f, itemsize):
    """Pick (tb, tf) block dims for the [B, F] view.

    Constraints: tb must be a multiple of 8 or equal B; tf must be a multiple
    of 128 or equal F.  Ragged last blocks are masked by Pallas (fine for an
    elementwise op).
    """
    target = _TILE_TARGET_BYTES
    row_bytes = max(1, f * itemsize)
    rows_target = max(1, target // row_bytes)

    if rows_target >= b:
        tb = b
        # Give the v7x megacore (2 TCs) at least two grid steps to share when
        # the batch is big enough to split without losing sublane density.
        if b >= 16:
            tb = max(8, (b // 2) // 8 * 8)
    elif rows_target >= 8:
        tb = (rows_target // 8) * 8
    else:
        tb = 8 if b >= 8 else b

    # Feature (lane) tile: full extent if the row budget allows, else a
    # 128-multiple slice of the row (ragged tail masked).
    per_row_budget = max(1, target // max(1, tb * itemsize))
    if per_row_budget >= f:
        tf = f
    else:
        tf = max(128, (per_row_budget // 128) * 128)
        if tf >= f:
            tf = f
    return tb, tf


def drop_path(x, key, p=0.1, training=False, *,
              min_pallas_bytes=256 * 1024, donate_x=False):
    """JAX/Pallas equivalent of the PyTorch drop_path forward pass."""
    if math.isclose(p, 0.0) or not training:
        return x
    if p >= 1.0:
        raise ValueError(f"drop_path probability must be < 1, got {p}")

    keep_prob = 1.0 - p
    orig_shape = x.shape
    b = orig_shape[0]
    f = 1
    for d in orig_shape[1:]:
        f *= d

    # Per-sample scale (0 or 1/keep_prob), always computed in f32:
    #   scale = floor(keep_prob + U[0,1)) / keep_prob
    rand = jax.random.uniform(key, (b,), dtype=jnp.float32)
    scale = jnp.floor(keep_prob + rand) * (1.0 / keep_prob)

    itemsize = jnp.dtype(x.dtype).itemsize
    total_bytes = b * f * itemsize
    if total_bytes < min_pallas_bytes:
        # Tiny activations: pallas_call launch + per-step overhead dominate;
        # a fused XLA broadcast multiply is strictly faster.
        bshape = (b,) + (1,) * (len(orig_shape) - 1)
        return (x * scale.reshape(bshape)).astype(x.dtype)

    x2d = x.reshape(b, f)          # contiguous reshape -> no HBM copy
    scale2d = scale.reshape(b, 1)

    tb, tf = _choose_tiles(b, f, itemsize)
    grid = (pl.cdiv(b, tb), pl.cdiv(f, tf))

    out2d = pl.pallas_call(
        _drop_path_kernel,
        out_shape=jax.ShapeDtypeStruct((b, f), x.dtype),
        grid=grid,
        in_specs=[
            pl.BlockSpec((tb, 1), lambda bi, fi: (bi, 0)),    # per-sample scale
            pl.BlockSpec((tb, tf), lambda bi, fi: (bi, fi)),  # activations
        ],
        out_specs=pl.BlockSpec((tb, tf), lambda bi, fi: (bi, fi)),
        compiler_params=pltpu.CompilerParams(
            # Every tile is independent -> shardable across v7x's 2 TCs.
            dimension_semantics=("parallel", "parallel"),
        ),
        # In-place writeback when the caller donates x (operand 0 is scale2d,
        # operand 1 is x2d).  Without donation XLA would insert a copy, so it
        # is opt-in.
        input_output_aliases={1: 0} if donate_x else {},
    )(scale2d, x2d)

    return out2d.reshape(orig_shape)


class DropPath:
    """Stateless JAX counterpart of the PyTorch DropPath module."""

    def __init__(self, p=0.1):
        self._p = p
        self.training = True

    def __repr__(self):
        return "{}(p={})".format(self.__class__.__name__, self._p)

    def __call__(self, x, key):
        return drop_path(x, key, self._p, self.training)


if __name__ == "__main__":
    key = jax.random.PRNGKey(0)
    k_x, k_drop = jax.random.split(key)

    # Small NCHW-like input: batch=2, channels=4, spatial=16x16.
    x = jax.random.normal(k_x, (2, 4, 16, 16), dtype=jnp.float32)
    p = 0.1
    keep_prob = 1.0 - p

    # Force the Pallas path (the demo tensor is tiny and would otherwise take
    # the XLA fast path).
    out = jax.block_until_ready(
        drop_path(x, k_drop, p, training=True, min_pallas_bytes=0))

    # Pure-JAX reference using the same RNG draw as the wrapper.
    rand_ref = jax.random.uniform(k_drop, (x.shape[0],), dtype=jnp.float32)
    scale_ref = jnp.floor(keep_prob + rand_ref) * (1.0 / keep_prob)
    ref = x * scale_ref.reshape(-1, 1, 1, 1)
    assert out.shape == x.shape and out.dtype == x.dtype
    assert jnp.allclose(out, ref, atol=1e-6, rtol=1e-6), "pallas path mismatch"

    # Default small-input fast path must match too.
    out_fast = jax.block_until_ready(drop_path(x, k_drop, p, training=True))
    assert jnp.allclose(out_fast, ref, atol=1e-6, rtol=1e-6), "fast path mismatch"

    # Module wrapper in eval mode: identity.
    module = DropPath(p=p)
    module.training = False
    out_eval = jax.block_until_ready(module(x, k_drop))
    assert jnp.array_equal(out_eval, x)

    print("KERNEL_OK")
</pallas_src>

<mosaic_0001>
module attributes {stable_mosaic.version = 11 : i64} {
  func.func @_drop_path_kernel(%arg0: i32, %arg1: i32, %arg2: memref<2x1xf32, #tpu.memory_space<vmem>>, %arg3: memref<2x1024xf32, #tpu.memory_space<vmem>>, %arg4: memref<2x1024xf32, #tpu.memory_space<vmem>>) attributes {dimension_semantics = [#tpu.dimension_semantics<parallel>, #tpu.dimension_semantics<parallel>], iteration_bounds = array<i64: 1, 1>, scalar_prefetch = 0 : i64, scratch_operands = 0 : i64, tpu.core_type = #tpu.core_type<tc>, window_params = [{transform_indices = @transform_0, window_bounds = array<i64: 2, 1>}, {transform_indices = @transform_1, window_bounds = array<i64: 2, 1024>}, {transform_indices = @transform_2, window_bounds = array<i64: 2, 1024>}]} {
    %c0 = arith.constant 0 : index
    %c0_0 = arith.constant 0 : index
    %0 = vector.load %arg3[%c0, %c0_0] : memref<2x1024xf32, #tpu.memory_space<vmem>>, vector<2x1024xf32>
    %c0_1 = arith.constant 0 : index
    %c0_2 = arith.constant 0 : index
    %1 = vector.load %arg2[%c0_1, %c0_2] : memref<2x1xf32, #tpu.memory_space<vmem>>, vector<2x1xf32>
    %2 = vector.broadcast %1 : vector<2x1xf32> to vector<2x1024xf32>
    %3 = arith.mulf %0, %2 : vector<2x1024xf32>
    %c0_3 = arith.constant 0 : index
    %c0_4 = arith.constant 0 : index
    %4 = vector.load %arg4[%c0_3, %c0_4] : memref<2x1024xf32, #tpu.memory_space<vmem>>, vector<2x1024xf32>
    tpu.vector_store %arg4[%c0_3, %c0_4], %3 {strides = array<i32>} : memref<2x1024xf32, #tpu.memory_space<vmem>>, vector<2x1024xf32>,
    return
  }
  func.func @transform_0(%arg0: i32, %arg1: i32) -> (i32, i32) {
    %c0_i32 = arith.constant 0 : i32
    %c0_i32_0 = arith.constant 0 : i32
    return %arg0, %c0_i32 : i32, i32
  }
  func.func @transform_1(%arg0: i32, %arg1: i32) -> (i32, i32) {
    %c0_i32 = arith.constant 0 : i32
    return %arg0, %arg1 : i32, i32
  }
  func.func @transform_2(%arg0: i32, %arg1: i32) -> (i32, i32) {
    %c0_i32 = arith.constant 0 : i32
    return %arg0, %arg1 : i32, i32
  }
}

</mosaic_0001>

<bundles_post_ra>
// kernel: tpu_custom_call.1
= control target key start
LH: loop header
LB: loop body
LE: loop exit
PB: predicated region body
PF: predicated region fallthrough
CT: control target
= control target key end

     0   :  { %7 = vsyncpa [#allocation3], 0  ;;  %s157_s0 = inlined_call_operand.vmem [shape: f32[2,1], index: 0, kind: input, shape index: {}]   ;;  %s158_s1 = inlined_call_operand.hbm [shape: f32[2,1024], index: 1, kind: input, shape index: {}]   ;;  %s159_s2 = inlined_call_operand.hbm [shape: f32[2,1024], index: 2, kind: output, shape index: {}]  }
   0x1   :  { %8 = vsyncpa [#allocation4], 0  ;;  %s111_s9 = smov [#allocation2]   ;;  %s63_s13 = scalar_lea.hbm %s158_s1, 256 }
   0x2   :  { %s17_s10 = sshll.u32 %s111_s9, 4  ;;  %p64_p0 = scmp.ne.s32.totalorder %s158_s1, %s63_s13  ;;  %s18_s10 = int_to_ptr.vmem [resolvable:$true] %s17_s10 }
   0x3   :  { %p67_p1 = scmp.lt.u32.totalorder %s63_s13, %s158_s1 }
   0x5   :  { %p69_p2 = pnand %p67_p1, %p64_p0 }
   0x7   :  { %72 = shalt.err (!%p69_p2)
}
   0x8   :  { %s73_s18 = scalar_lea.vmem %s18_s10, 256  ;;  %p78_p4 = scmp.lt.s32.totalorder %s18_s10, %s18_s10 }
   0x9   :  { %p74_p3 = scmp.ne.s32.totalorder %s18_s10, %s73_s18  ;;  %p79_p5 = scmp.lt.s32.totalorder %s73_s18, %s73_s18 }
   0xb   :  { %p80_p6 = por %p79_p5, %p78_p4 }
   0xd   :  { %p81_p7 = pnand %p80_p6, %p74_p3 }
   0xf   :  { %84 = shalt.err (!%p81_p7)
}
  0x10   :  { %20 = dma.hbm_to_vmem [thread:$0]  %s158_s1, 256, %s18_s10, [#allocation3]  }
  0x11   :  { %107 = dma.done.wait [#allocation3], 256  }
  0x12   :  { %108 = vsyncadd [#allocation3], 4294967040  ;;  %v112_v0 = vmov 0   ;;  %v26_v1 = vld [vmem:[%s157_s0] sm:$0x3]  ;;  %v34_v4 = vlaneseq  ;;  %v25_v10 = vld [vmem:[#allocation2 + $0x8] sm:$0xff] }
  0x13   :  { %62 = vset.pattern.permute.xlu0 %v112_v0  ;;  %v113_v2 = vmov 269488144   ;;  %v24_v9 = vld [vmem:[#allocation2] sm:$0xff]  ;;  %s114_s23 = smov [#allocation5]  }
  0x14   :  { %29 = vperm.xlu0 %62, %v26_v1   ;;  %v32_v3 = vunpack.c.l.s4 %v113_v2  ;;  %v35_v6 = vshrl.u32 %v34_v4, 7  ;;  %s49_s1 = sshll.u32 %s114_s23, 4  ;;  %s50_s1 = int_to_ptr.vmem [resolvable:$true] %s49_s1 }
  0x15   :  { %s85_s24 = scalar_lea.vmem %s50_s1, 256  ;;  %p90_p9 = scmp.lt.s32.totalorder %s50_s1, %s50_s1 }
  0x16   :  { %v33_v5 = vunpack.c.0.s8 %v32_v3  ;;  %p86_p8 = scmp.ne.s32.totalorder %s50_s1, %s85_s24  ;;  %p91_p10 = scmp.lt.s32.totalorder %s85_s24, %s85_s24 }
  0x18   :  { %v36_v7 = vsub.s32 %v33_v5, %v35_v6  ;;  %p92_p11 = por %p91_p10, %p90_p9 }
  0x1a   :  { %p93_p12 = pnand %p92_p11, %p86_p8 }
  0x93   :  { %v30_v8 = vpop.permute.xlu0 %29 }
  0x94   :  { %v37_v11 = vrot.slane %v30_v8, %v36_v7 }
  0x96   :  { %v39_v12 = vmul.f32 %v37_v11, %v24_v9  ;;  %v40_v13 = vmul.f32 %v37_v11, %v25_v10 }
  0x98   :  { %41 = vst [vmem:[#allocation5] sm:$0xff] %v39_v12  ;;  %42 = vst [vmem:[#allocation5 + $0x8] sm:$0xff] %v40_v13 }
  0x99   :  { %96 = shalt.err (!%p93_p12)
}
  0x9a   :  { %s97_s26 = scalar_lea.hbm %s159_s2, 256 }
  0x9b   :  { %p98_p13 = scmp.ne.s32.totalorder %s159_s2, %s97_s26  ;;  %p101_p0 = scmp.lt.u32.totalorder %s97_s26, %s159_s2 }
  0x9d   :  { %p103_p1 = pnand %p101_p0, %p98_p13 }
  0x9f   :  { %106 = shalt.err (!%p103_p1)
}
  0xa0   :  { %52 = dma.vmem_to_hbm [thread:$0]  %s50_s1, 256, %s159_s2, [#allocation4]  }
  0xa1   :  { %109 = dma.done.wait [#allocation4], 256  }
  0xa2   :  { %110 = vsyncadd [#allocation4], 4294967040 }
  0xa3   :  { %56 = vsyncpa [#allocation3], 1 }
  0xa4   :  { %57 = vsyncpa [#allocation4], 1 }

</bundles_post_ra>
